<compile_context>
chip_gen: v7x
topology: tpu7x:2x2x1
jax: 0.10.0
libtpu: 0.0.40
codegen_flags: <defaults>
</compile_context>

<pallas_src>
import functools

import jax
import jax.numpy as jnp
from jax.experimental import pallas as pl
from jax.experimental.pallas import tpu as pltpu


def _ln_kernel(x_ref, w_ref, b_ref, o_ref):
    # x_ref: [tm, D], w_ref: [D, N_pad], b_ref: [1, N_pad], o_ref: [tm, N_pad]
    # Plain [tm, D] @ [D, N_pad] on the MXU (natural K, N order; no transpose).
    z = jnp.dot(x_ref[...], w_ref[...], preferred_element_type=jnp.float32)
    z = z + b_ref[...]  # broadcast [1, N_pad] over [tm, N_pad]
    # PyTorch nn.Softplus (beta=1, threshold=20): log1p(exp(x)), linear above 20.
    # The min() only protects the untaken branch of the where from overflow.
    z_safe = jnp.minimum(z, 20.0)
    sp = jnp.where(z > 20.0, z, jnp.log1p(jnp.exp(z_safe)))
    o_ref[...] = sp.astype(o_ref.dtype)


def prepare_ln_params(weight, bias):
    """One-time parameter preparation (keep OFF the per-call hot path).

    Args:
      weight: [n_units, D] float32 (PyTorch nn.Linear layout, D = C*H*W)
      bias:   [n_units]    float32
    Returns:
      w_t:  [D, n_pad] float32 — zero-padded to a multiple of 128 output
            columns and pre-transposed so the kernel feeds the MXU directly.
      b2d:  [1, n_pad] float32 — zero-padded bias.
    """
    n_units, _ = weight.shape
    n_pad = 128 * pl.cdiv(n_units, 128)
    w_p, b_p = weight, bias
    if n_pad != n_units:
        w_p = jnp.pad(weight, ((0, n_pad - n_units), (0, 0)))  # [n_pad, D]
        b_p = jnp.pad(bias, (0, n_pad - n_units))
    w_t = jnp.transpose(w_p)          # [D, n_pad], done once at setup
    b2d = b_p.reshape(1, n_pad)
    return w_t, b2d


@functools.partial(jax.jit, static_argnames=("n_units", "block_b"))
def ln_forward(x, w_t, bias2d, *, n_units, block_b=1024):
    """LN forward.

    Args:
      x:       [B, C, H, W] float32 (NCHW, like the PyTorch module input)
      w_t:     [D, n_pad]   float32 from prepare_ln_params
      bias2d:  [1, n_pad]   float32 from prepare_ln_params
      n_units: true (unpadded) number of output units (static)
      block_b: batch tile (rows per grid step) once B exceeds it.  1024 keeps
               VMEM ~10 MiB (safe under v5e's 16 MiB default scoped limit);
               raise vmem_limit_bytes if you push it higher.
    Returns:
      [B, n_units] float32
    """
    B = x.shape[0]
    D = w_t.shape[0]
    n_pad = w_t.shape[1]

    x_flat = x.reshape(B, D)  # Flatten (row-major, identical to torch.flatten)
    # Dropout(drop_p=0) is the identity in both train and eval.
    # TODO(synk): drop_p > 0 would need pltpu.prng_seed / stateful_bernoulli.

    # Batch tiling: single full-B block when small, else block_b-row tiles.
    # No explicit padding of x — Pallas masks the ragged final block.
    tm = B if B <= block_b else block_b
    grid_b = pl.cdiv(B, tm)

    cost = pl.CostEstimate(
        flops=2 * B * D * n_pad,
        transcendentals=2 * B * n_pad,  # exp + log1p per output
        bytes_accessed=4 * (B * D + D * n_pad + n_pad + B * n_pad),
    )

    out = pl.pallas_call(
        _ln_kernel,
        out_shape=jax.ShapeDtypeStruct((B, n_pad), jnp.float32),
        grid=(grid_b,),
        in_specs=[
            pl.BlockSpec((tm, D), lambda i: (i, 0)),        # x: tiled over batch
            pl.BlockSpec((D, n_pad), lambda i: (0, 0)),     # weight: VMEM-resident
            pl.BlockSpec((1, n_pad), lambda i: (0, 0)),     # bias: VMEM-resident
        ],
        out_specs=pl.BlockSpec((tm, n_pad), lambda i: (i, 0)),
        compiler_params=pltpu.CompilerParams(
            dimension_semantics=("parallel",),  # batch axis -> both v7x TCs
        ),
        cost_estimate=cost,
    )(x_flat, w_t, bias2d)

    # TODO(synk): if D ever grows much larger (bigger img_shape), add a K
    # reduction grid axis with an f32 VMEM accumulator to stay under the
    # per-generation scoped-VMEM limits.
    return out[:, :n_units]


def _reference(x, weight, bias):
    B = x.shape[0]
    x_flat = x.reshape(B, -1)
    z = x_flat @ weight.T + bias
    return jnp.where(z > 20.0, z, jnp.log1p(jnp.exp(jnp.minimum(z, 20.0))))


if __name__ == "__main__":
    # Small shapes consistent with the module: img_shape=(C, H, W)=(4, 16, 16),
    # n_units=5, batch=2.  Flattened dim D = C*H*W = 1024.
    B = 2
    C, H, W = 4, 16, 16
    n_units = 5
    D = C * H * W

    key = jax.random.PRNGKey(0)
    kx, kw, kb = jax.random.split(key, 3)

    x = jax.random.normal(kx, (B, C, H, W), dtype=jnp.float32)

    # Deterministic parameter init (mimics nn.Linear's uniform(-1/sqrt(D), 1/sqrt(D))).
    bound = 1.0 / jnp.sqrt(jnp.float32(D))
    weight = jax.random.uniform(kw, (n_units, D), dtype=jnp.float32,
                                minval=-bound, maxval=bound)
    bias = jax.random.uniform(kb, (n_units,), dtype=jnp.float32,
                              minval=-bound, maxval=bound)

    # One-time parameter prep (padding + transpose) — off the forward hot path.
    w_t, b2d = prepare_ln_params(weight, bias)
    w_t, b2d = jax.block_until_ready((w_t, b2d))

    out = ln_forward(x, w_t, b2d, n_units=n_units)
    out = jax.block_until_ready(out)

    ref = _reference(x, weight, bias)
    assert out.shape == (B, n_units), out.shape
    assert jnp.allclose(out, ref, atol=1e-5, rtol=1e-5), (out, ref)

    print("KERNEL_OK")
</pallas_src>

<mosaic_0001>
module attributes {stable_mosaic.version = 11 : i64} {
  func.func @_ln_kernel(%arg0: i32, %arg1: memref<2x1024xf32, #tpu.memory_space<vmem>>, %arg2: memref<1024x128xf32, #tpu.memory_space<vmem>>, %arg3: memref<1x128xf32, #tpu.memory_space<vmem>>, %arg4: memref<2x128xf32, #tpu.memory_space<vmem>>) attributes {dimension_semantics = [#tpu.dimension_semantics<parallel>], iteration_bounds = array<i64: 1>, scalar_prefetch = 0 : i64, scratch_operands = 0 : i64, tpu.core_type = #tpu.core_type<tc>, window_params = [{transform_indices = @transform_0, window_bounds = array<i64: 2, 1024>}, {pipeline_mode = #tpu.pipeline_mode<synchronous>, transform_indices = @transform_1, window_bounds = array<i64: 1024, 128>}, {pipeline_mode = #tpu.pipeline_mode<synchronous>, transform_indices = @transform_2, window_bounds = array<i64: 1, 128>}, {transform_indices = @transform_3, window_bounds = array<i64: 2, 128>}]} {
    %c0 = arith.constant 0 : index
    %c0_0 = arith.constant 0 : index
    %0 = vector.load %arg1[%c0, %c0_0] : memref<2x1024xf32, #tpu.memory_space<vmem>>, vector<2x1024xf32>
    %c0_1 = arith.constant 0 : index
    %c0_2 = arith.constant 0 : index
    %1 = vector.load %arg2[%c0_1, %c0_2] : memref<1024x128xf32, #tpu.memory_space<vmem>>, vector<1024x128xf32>
    %cst = arith.constant dense<0.000000e+00> : vector<2x128xf32>
    %2 = tpu.matmul %0, %1, %cst {dimension_numbers = #tpu.dot_dimension_numbers<[1], [0], [0], [1], [0, 0, 1, 1], [], []>} : vector<2x1024xf32>, vector<1024x128xf32>, vector<2x128xf32> -> vector<2x128xf32>
    %c0_3 = arith.constant 0 : index
    %c0_4 = arith.constant 0 : index
    %3 = vector.load %arg3[%c0_3, %c0_4] : memref<1x128xf32, #tpu.memory_space<vmem>>, vector<1x128xf32>
    %4 = vector.broadcast %3 : vector<1x128xf32> to vector<2x128xf32>
    %5 = arith.addf %2, %4 : vector<2x128xf32>
    %cst_5 = arith.constant 2.000000e+01 : f32
    %6 = vector.broadcast %cst_5 : f32 to vector<2x128xf32>
    %7 = arith.minimumf %5, %6 : vector<2x128xf32>
    %cst_6 = arith.constant 2.000000e+01 : f32
    %8 = vector.broadcast %cst_6 : f32 to vector<2x128xf32>
    %9 = arith.cmpf ogt, %5, %8 : vector<2x128xf32>
    %10 = math.exp %7 : vector<2x128xf32>
    %11 = math.log1p %10 : vector<2x128xf32>
    %12 = arith.select %9, %5, %11 : vector<2x128xi1>, vector<2x128xf32>
    %c0_7 = arith.constant 0 : index
    %c0_8 = arith.constant 0 : index
    %13 = vector.load %arg4[%c0_7, %c0_8] : memref<2x128xf32, #tpu.memory_space<vmem>>, vector<2x128xf32>
    tpu.vector_store %arg4[%c0_7, %c0_8], %12 {strides = array<i32>} : memref<2x128xf32, #tpu.memory_space<vmem>>, vector<2x128xf32>,
    return
  }
  func.func @transform_0(%arg0: i32) -> (i32, i32) {
    %c0_i32 = arith.constant 0 : i32
    %c0_i32_0 = arith.constant 0 : i32
    return %arg0, %c0_i32 : i32, i32
  }
  func.func @transform_1(%arg0: i32) -> (i32, i32) {
    %c0_i32 = arith.constant 0 : i32
    %c0_i32_0 = arith.constant 0 : i32
    %c0_i32_1 = arith.constant 0 : i32
    return %c0_i32, %c0_i32_0 : i32, i32
  }
  func.func @transform_2(%arg0: i32) -> (i32, i32) {
    %c0_i32 = arith.constant 0 : i32
    %c0_i32_0 = arith.constant 0 : i32
    %c0_i32_1 = arith.constant 0 : i32
    return %c0_i32, %c0_i32_0 : i32, i32
  }
  func.func @transform_3(%arg0: i32) -> (i32, i32) {
    %c0_i32 = arith.constant 0 : i32
    %c0_i32_0 = arith.constant 0 : i32
    return %arg0, %c0_i32 : i32, i32
  }
}

</mosaic_0001>

<bundles_post_ra>
// kernel: ln_forward.1
= control target key start
LH: loop header
LB: loop body
LE: loop exit
PB: predicated region body
PF: predicated region fallthrough
CT: control target
= control target key end

     0   :  { %8 = vsyncpa [#allocation3], 0  ;;  %s917_s0 = inlined_call_operand.vmem [shape: f32[2,1024], index: 0, kind: input, shape index: {}]   ;;  %s918_s1 = inlined_call_operand.hbm [shape: f32[1024,128], index: 1, kind: input, shape index: {}]   ;;  %s919_s2 = inlined_call_operand.vmem [shape: f32[1,128], index: 2, kind: input, shape index: {}]   ;;  %s920_s3 = inlined_call_operand.hbm [shape: f32[2,128], index: 3, kind: output, shape index: {}]  }
   0x1   :  { %9 = vsyncpa [#allocation4], 0  ;;  %s848_s12 = smov [#allocation2]   ;;  %s800_s16 = scalar_lea.hbm %s918_s1, 16384 }
   0x2   :  { %s17_s13 = sshll.u32 %s848_s12, 4  ;;  %p801_p0 = scmp.ne.s32.totalorder %s918_s1, %s800_s16  ;;  %s18_s13 = int_to_ptr.vmem [resolvable:$true] %s17_s13 }
   0x3   :  { %p804_p1 = scmp.lt.u32.totalorder %s800_s16, %s918_s1 }
   0x5   :  { %p806_p2 = pnand %p804_p1, %p801_p0 }
   0x7   :  { %809 = shalt.err (!%p806_p2)
}
   0x8   :  { %s810_s21 = scalar_lea.vmem %s18_s13, 16384  ;;  %p815_p4 = scmp.lt.s32.totalorder %s18_s13, %s18_s13 }
   0x9   :  { %p811_p3 = scmp.ne.s32.totalorder %s18_s13, %s810_s21  ;;  %p816_p5 = scmp.lt.s32.totalorder %s810_s21, %s810_s21 }
   0xb   :  { %p817_p6 = por %p816_p5, %p815_p4 }
   0xd   :  { %p818_p7 = pnand %p817_p6, %p811_p3 }
   0xf   :  { %821 = shalt.err (!%p818_p7)
}
  0x10   :  { %s849_s22 = smov 128   ;;  %s850_s23 = smov 8  }
  0x11   :  { %23 = dma.hbm_to_vmem [thread:$0]  %s918_s1, 16384, %s18_s13, [#allocation3], %s849_s22, %s849_s22, %s850_s23  }
  0x12   :  { %844 = dma.done.wait [#allocation3], 16384  }
  0x13   :  { %845 = vsyncadd [#allocation3], 4294950912  ;;  %v47_v0 = vld [vmem:[#allocation2 + $0x80] sm:$0xff]  ;;  %v48_v1 = vld [vmem:[#allocation2 + $0x88] sm:$0xff]  ;;  %v851_v47 = vmov 1983009808   ;;  %v172_v49 = vlaneseq }
  0x14   :  { %v31_v2 = vld [vmem:[#allocation2] sm:$0xff]  ;;  %v661_v3 = vpack.c.bf16 %v48_v1, %v47_v0  ;;  %v32_v4 = vld [vmem:[#allocation2 + $0x8] sm:$0xff]  ;;  %v49_v11 = vld [vmem:[#allocation2 + $0x90] sm:$0xff]  ;;  %v170_v48 = vunpack.c.l.s4 %v851_v47 }
  0x15   :  { %v79_v5 = vld [vmem:[#allocation2 + $0x180] sm:$0xff]  ;;  %v80_v6 = vld [vmem:[#allocation2 + $0x188] sm:$0xff]  ;;  %v663_v7 = vpack.c.bf16 %v32_v4, %v31_v2  ;;  %v50_v13 = vld [vmem:[#allocation2 + $0x98] sm:$0xff]  ;;  %v173_v0 = vshrl.u32 %v172_v49, 7 }
  0x16   :  { %v693_v8 = vpack.c.bf16 %v80_v6, %v79_v5  ;;  %v63_v9 = vld [vmem:[#allocation2 + $0x100] sm:$0xff]  ;;  %v64_v10 = vld [vmem:[#allocation2 + $0x108] sm:$0xff]  ;;  %662 = vmatprep.subr.bf16.mxu0 %v661_v3  ;;  %v33_v14 = vld [vmem:[#allocation2 + $0x10] sm:$0xff]  ;;  %v665_v16 = vpack.c.bf16 %v50_v13, %v49_v11  ;;  %v171_v63 = vunpack.c.0.s8 %v170_v48 }
  0x17   :  { %v695_v12 = vpack.c.bf16 %v64_v10, %v63_v9  ;;  %v34_v15 = vld [vmem:[#allocation2 + $0x18] sm:$0xff]  ;;  %664 = vmatpush3.bf16.msra.mxu0 %v663_v7  ;;  %v81_v18 = vld [vmem:[#allocation2 + $0x190] sm:$0xff]  ;;  %v51_v23 = vld [vmem:[#allocation2 + $0xa0] sm:$0xff] }
  0x18   :  { %694 = vmatprep.subr.bf16.mxu1 %v693_v8  ;;  %v667_v17 = vpack.c.bf16 %v34_v15, %v33_v14  ;;  %v82_v19 = vld [vmem:[#allocation2 + $0x198] sm:$0xff]  ;;  %v65_v20 = vld [vmem:[#allocation2 + $0x110] sm:$0xff]  ;;  %v52_v24 = vld [vmem:[#allocation2 + $0xa8] sm:$0xff]  ;;  %666 = vmatprep.subr.bf16.mxu0 %v665_v16  ;;  %v885_v13 = vsub.s32 %v171_v63, %v173_v0 }
  0x19   :  { %696 = vmatpush3.bf16.msra.mxu1 %v695_v12  ;;  %v697_v21 = vpack.c.bf16 %v82_v19, %v81_v18  ;;  %v66_v22 = vld [vmem:[#allocation2 + $0x118] sm:$0xff]  ;;  %v669_v26 = vpack.c.bf16 %v52_v24, %v51_v23  ;;  %v35_v27 = vld [vmem:[#allocation2 + $0x20] sm:$0xff]  ;;  %v36_v28 = vld [vmem:[#allocation2 + $0x28] sm:$0xff] }
  0x1a   :  { %v699_v25 = vpack.c.bf16 %v66_v22, %v65_v20  ;;  %v83_v29 = vld [vmem:[#allocation2 + $0x1a0] sm:$0xff]  ;;  %v84_v30 = vld [vmem:[#allocation2 + $0x1a8] sm:$0xff]  ;;  %v671_v33 = vpack.c.bf16 %v36_v28, %v35_v27  ;;  %v53_v35 = vld [vmem:[#allocation2 + $0xb0] sm:$0xff] }
  0x1b   :  { %698 = vmatprep.subr.bf16.mxu1 %v697_v21  ;;  %v67_v31 = vld [vmem:[#allocation2 + $0x120] sm:$0xff]  ;;  %v68_v32 = vld [vmem:[#allocation2 + $0x128] sm:$0xff]  ;;  %668 = vmatpush3.bf16.msra.mxu0 %v667_v17  ;;  %v701_v34 = vpack.c.bf16 %v84_v30, %v83_v29  ;;  %v54_v36 = vld [vmem:[#allocation2 + $0xb8] sm:$0xff] }
  0x1c   :  { %v37_v37 = vld [vmem:[#allocation2 + $0x30] sm:$0xff]  ;;  %670 = vmatprep.subr.bf16.mxu0 %v669_v26  ;;  %v703_v38 = vpack.c.bf16 %v68_v32, %v67_v31  ;;  %v673_v39 = vpack.c.bf16 %v54_v36, %v53_v35  ;;  %v38_v40 = vld [vmem:[#allocation2 + $0x38] sm:$0xff]  ;;  %v55_v46 = vld [vmem:[#allocation2 + $0xc0] sm:$0xff] }
  0x1d   :  { %700 = vmatpush3.bf16.msra.mxu1 %v699_v25  ;;  %v85_v41 = vld [vmem:[#allocation2 + $0x1b0] sm:$0xff]  ;;  %v86_v42 = vld [vmem:[#allocation2 + $0x1b8] sm:$0xff]  ;;  %v56_v50 = vld [vmem:[#allocation2 + $0xc8] sm:$0xff]  ;;  %v675_v51 = vpack.c.bf16 %v38_v40, %v37_v37 }
  0x1e   :  { %702 = vmatprep.subr.bf16.mxu1 %v701_v34  ;;  %v705_v43 = vpack.c.bf16 %v86_v42, %v85_v41  ;;  %v69_v44 = vld [vmem:[#allocation2 + $0x130] sm:$0xff]  ;;  %v70_v45 = vld [vmem:[#allocation2 + $0x138] sm:$0xff]  ;;  %v87_v52 = vld [vmem:[#allocation2 + $0x1c0] sm:$0xff]  ;;  %v677_v55 = vpack.c.bf16 %v56_v50, %v55_v46 }
  0x1f   :  { %672 = vmatpush3.bf16.msra.mxu0 %v671_v33  ;;  %v88_v53 = vld [vmem:[#allocation2 + $0x1c8] sm:$0xff]  ;;  %v707_v54 = vpack.c.bf16 %v70_v45, %v69_v44  ;;  %v39_v56 = vld [vmem:[#allocation2 + $0x40] sm:$0xff]  ;;  %v57_v61 = vld [vmem:[#allocation2 + $0xd0] sm:$0xff] }
  0x20   :  { %674 = vmatprep.subr.bf16.mxu0 %v673_v39  ;;  %v40_v57 = vld [vmem:[#allocation2 + $0x48] sm:$0xff]  ;;  %v71_v58 = vld [vmem:[#allocation2 + $0x140] sm:$0xff]  ;;  %v709_v59 = vpack.c.bf16 %v88_v53, %v87_v52  ;;  %v58_v62 = vld [vmem:[#allocation2 + $0xd8] sm:$0xff] }
  0x21   :  { %704 = vmatpush3.bf16.msra.mxu1 %v703_v38  ;;  %v72_v60 = vld [vmem:[#allocation2 + $0x148] sm:$0xff]  ;;  %v89_v1 = vld [vmem:[#allocation2 + $0x1d0] sm:$0xff]  ;;  %v90_v2 = vld [vmem:[#allocation2 + $0x1d8] sm:$0xff]  ;;  %v679_v3 = vpack.c.bf16 %v40_v57, %v39_v56  ;;  %v681_v5 = vpack.c.bf16 %v58_v62, %v57_v61 }
  0x22   :  { %706 = vmatprep.subr.bf16.mxu1 %v705_v43  ;;  %v711_v4 = vpack.c.bf16 %v72_v60, %v71_v58  ;;  %v41_v6 = vld [vmem:[#allocation2 + $0x50] sm:$0xff]  ;;  %v42_v7 = vld [vmem:[#allocation2 + $0x58] sm:$0xff]  ;;  %v713_v9 = vpack.c.bf16 %v90_v2, %v89_v1  ;;  %v59_v11 = vld [vmem:[#allocation2 + $0xe0] sm:$0xff] }
  0x23   :  { %676 = vmatpush3.bf16.msra.mxu0 %v675_v51  ;;  %v73_v8 = vld [vmem:[#allocation2 + $0x150] sm:$0xff]  ;;  %v74_v10 = vld [vmem:[#allocation2 + $0x158] sm:$0xff]  ;;  %v60_v12 = vld [vmem:[#allocation2 + $0xe8] sm:$0xff]  ;;  %v683_v16 = vpack.c.bf16 %v42_v7, %v41_v6 }
  0x24   :  { %678 = vmatprep.subr.bf16.mxu0 %v677_v55  ;;  %v91_v14 = vld [vmem:[#allocation2 + $0x1e0] sm:$0xff]  ;;  %v92_v15 = vld [vmem:[#allocation2 + $0x1e8] sm:$0xff]  ;;  %v715_v18 = vpack.c.bf16 %v74_v10, %v73_v8  ;;  %v685_v19 = vpack.c.bf16 %v60_v12, %v59_v11  ;;  %v61_v25 = vld [vmem:[#allocation2 + $0xf0] sm:$0xff] }
  0x25   :  { %708 = vmatpush3.bf16.msra.mxu1 %v707_v54  ;;  %v43_v17 = vld [vmem:[#allocation2 + $0x60] sm:$0xff]  ;;  %v44_v20 = vld [vmem:[#allocation2 + $0x68] sm:$0xff]  ;;  %v717_v23 = vpack.c.bf16 %v92_v15, %v91_v14  ;;  %v62_v26 = vld [vmem:[#allocation2 + $0xf8] sm:$0xff] }
  0x26   :  { %710 = vmatprep.subr.bf16.mxu1 %v709_v59  ;;  %v75_v21 = vld [vmem:[#allocation2 + $0x160] sm:$0xff]  ;;  %v76_v24 = vld [vmem:[#allocation2 + $0x168] sm:$0xff]  ;;  %v93_v29 = vld [vmem:[#allocation2 + $0x1f0] sm:$0xff]  ;;  %v687_v31 = vpack.c.bf16 %v44_v20, %v43_v17  ;;  %v689_v35 = vpack.c.bf16 %v62_v26, %v61_v25 }
  0x27   :  { %680 = vmatpush3.bf16.msra.mxu0 %v679_v3  ;;  %v29_v22 = vld [vmem:[%s917_s0] sm:$0xff]  ;;  %v94_v30 = vld [vmem:[#allocation2 + $0x1f8] sm:$0xff]  ;;  %v719_v34 = vpack.c.bf16 %v76_v24, %v75_v21  ;;  %v45_v36 = vld [vmem:[#allocation2 + $0x70] sm:$0xff] }
  0x28   :  { %682 = vmatprep.subr.bf16.mxu0 %v681_v5  ;;  %v175_v27 = vrot.slane %v29_v22, %v885_v13  ;;  %v168_v28 = vcombine.high %v29_v22, %v29_v22  ;;  %v46_v37 = vld [vmem:[#allocation2 + $0x78] sm:$0xff]  ;;  %v77_v38 = vld [vmem:[#allocation2 + $0x170] sm:$0xff]  ;;  %v721_v39 = vpack.c.bf16 %v94_v30, %v93_v29  ;;  %v111_v41 = vld [vmem:[#allocation2 + $0x280] sm:$0xff] }
  0x29   :  { %712 = vmatpush3.bf16.msra.mxu1 %v711_v4  ;;  %v78_v40 = vld [vmem:[#allocation2 + $0x178] sm:$0xff]  ;;  %v112_v42 = vld [vmem:[#allocation2 + $0x288] sm:$0xff]  ;;  %v143_v44 = vld [vmem:[#allocation2 + $0x380] sm:$0xff]  ;;  %v691_v46 = vpack.c.bf16 %v46_v37, %v45_v36 }
  0x2a   :  { %714 = vmatprep.subr.bf16.mxu1 %v713_v9  ;;  %v183_v32 = vcombine.high %v175_v27, %v175_v27  ;;  %v182_v33 = vrot.slane %v168_v28, %v885_v13  ;;  %v144_v45 = vld [vmem:[#allocation2 + $0x388] sm:$0xff]  ;;  %v723_v47 = vpack.c.bf16 %v78_v40, %v77_v38  ;;  %v725_v48 = vpack.c.bf16 %v112_v42, %v111_v41  ;;  %v95_v49 = vld [vmem:[#allocation2 + $0x200] sm:$0xff]  ;;  %v113_v54 = vld [vmem:[#allocation2 + $0x290] sm:$0xff] }
  0x2b   :  { %684 = vmatpush3.bf16.msra.mxu0 %v683_v16  ;;  %v96_v50 = vld [vmem:[#allocation2 + $0x208] sm:$0xff]  ;;  %v127_v51 = vld [vmem:[#allocation2 + $0x300] sm:$0xff]  ;;  %v757_v52 = vpack.c.bf16 %v144_v45, %v143_v44  ;;  %v114_v55 = vld [vmem:[#allocation2 + $0x298] sm:$0xff] }
  0x2c   :  { %686 = vmatprep.subr.bf16.mxu0 %v685_v19  ;;  %274 = vmatprep.mubr.f32.mxu0 %v183_v32  ;;  %v184_v43 = vcombine.high %v182_v33, %v182_v33  ;;  %v128_v53 = vld [vmem:[#allocation2 + $0x308] sm:$0xff]  ;;  %v145_v56 = vld [vmem:[#allocation2 + $0x390] sm:$0xff]  ;;  %v146_v57 = vld [vmem:[#allocation2 + $0x398] sm:$0xff]  ;;  %v727_v58 = vpack.c.bf16 %v96_v50, %v95_v49  ;;  %v729_v60 = vpack.c.bf16 %v114_v55, %v113_v54 }
  0x2d   :  { %716 = vmatpush3.bf16.msra.mxu1 %v715_v18  ;;  %v759_v59 = vpack.c.bf16 %v128_v53, %v127_v51  ;;  %v97_v61 = vld [vmem:[#allocation2 + $0x210] sm:$0xff]  ;;  %v98_v62 = vld [vmem:[#allocation2 + $0x218] sm:$0xff]  ;;  %v761_v0 = vpack.c.bf16 %v146_v57, %v145_v56  ;;  %v115_v2 = vld [vmem:[#allocation2 + $0x2a0] sm:$0xff] }
  0x2e   :  { %718 = vmatprep.subr.bf16.mxu1 %v717_v23  ;;  %344 = vmatprep.mubr.f32.mxu1 %v184_v43  ;;  %v129_v63 = vld [vmem:[#allocation2 + $0x310] sm:$0xff]  ;;  %v130_v1 = vld [vmem:[#allocation2 + $0x318] sm:$0xff]  ;;  %v116_v3 = vld [vmem:[#allocation2 + $0x2a8] sm:$0xff]  ;;  %v731_v6 = vpack.c.bf16 %v98_v62, %v97_v61 }
  0x2f   :  { %688 = vmatpush3.bf16.msra.mxu0 %v687_v31  ;;  %v147_v4 = vld [vmem:[#allocation2 + $0x3a0] sm:$0xff]  ;;  %v148_v5 = vld [vmem:[#allocation2 + $0x3a8] sm:$0xff]  ;;  %v763_v7 = vpack.c.bf16 %v130_v1, %v129_v63  ;;  %v733_v8 = vpack.c.bf16 %v116_v3, %v115_v2  ;;  %v117_v15 = vld [vmem:[#allocation2 + $0x2b0] sm:$0xff] }
  0x30   :  { %690 = vmatprep.subr.bf16.mxu0 %v689_v35  ;;  %v99_v9 = vld [vmem:[#allocation2 + $0x220] sm:$0xff]  ;;  %v100_v10 = vld [vmem:[#allocation2 + $0x228] sm:$0xff]  ;;  %v765_v12 = vpack.c.bf16 %v148_v5, %v147_v4  ;;  %v118_v16 = vld [vmem:[#allocation2 + $0x2b8] sm:$0xff] }
  0x31   :  { %720 = vmatpush3.bf16.msra.mxu1 %v719_v34  ;;  %v131_v11 = vld [vmem:[#allocation2 + $0x320] sm:$0xff]  ;;  %v132_v14 = vld [vmem:[#allocation2 + $0x328] sm:$0xff]  ;;  %v149_v17 = vld [vmem:[#allocation2 + $0x3b0] sm:$0xff]  ;;  %v735_v19 = vpack.c.bf16 %v100_v10, %v99_v9  ;;  %v737_v21 = vpack.c.bf16 %v118_v16, %v117_v15 }
  0x32   :  { %722 = vmatprep.subr.bf16.mxu1 %v721_v39  ;;  %v150_v18 = vld [vmem:[#allocation2 + $0x3b8] sm:$0xff]  ;;  %v767_v20 = vpack.c.bf16 %v132_v14, %v131_v11  ;;  %v101_v22 = vld [vmem:[#allocation2 + $0x230] sm:$0xff]  ;;  %v120_v28 = vld [vmem:[#allocation2 + $0x2c8] sm:$0xff] }
  0x33   :  { %692 = vmatpush3.bf16.msra.mxu0 %v691_v46  ;;  %v102_v23 = vld [vmem:[#allocation2 + $0x238] sm:$0xff]  ;;  %v133_v24 = vld [vmem:[#allocation2 + $0x330] sm:$0xff]  ;;  %v769_v25 = vpack.c.bf16 %v150_v18, %v149_v17  ;;  %v151_v29 = vld [vmem:[#allocation2 + $0x3c0] sm:$0xff] }
  0x34   :  { %726 = vmatprep.subr.bf16.mxu0 %v725_v48  ;;  %v134_v26 = vld [vmem:[#allocation2 + $0x338] sm:$0xff]  ;;  %v152_v30 = vld [vmem:[#allocation2 + $0x3c8] sm:$0xff]  ;;  %v739_v32 = vpack.c.bf16 %v102_v23, %v101_v22  ;;  %v103_v37 = vld [vmem:[#allocation2 + $0x240] sm:$0xff] }
  0x35   :  { %724 = vmatpush3.bf16.msra.mxu1 %v723_v47  ;;  %v30_v31 = vld [vmem:[%s917_s0 + $0x8] sm:$0xff]  ;;  %v771_v35 = vpack.c.bf16 %v134_v26, %v133_v24  ;;  %v135_v39 = vld [vmem:[#allocation2 + $0x340] sm:$0xff]  ;;  %v773_v40 = vpack.c.bf16 %v152_v30, %v151_v29  ;;  %v121_v42 = vld [vmem:[#allocation2 + $0x2d0] sm:$0xff] }
  0x36   :  { %758 = vmatprep.subr.bf16.mxu1 %v757_v52  ;;  %275 = vmatmul.mubr.f32.vlgmr.msra.gmra.mrb[0].mxu0 %v175_v27  ;;  %v119_v27 = vld [vmem:[#allocation2 + $0x2c0] sm:$0xff]  ;;  %v185_v34 = vcombine.high %v30_v31, %v30_v31  ;;  %v104_v38 = vld [vmem:[#allocation2 + $0x248] sm:$0xff]  ;;  %v122_v43 = vld [vmem:[#allocation2 + $0x2d8] sm:$0xff] }
  0x37   :  { %728 = vmatpush3.bf16.msra.mxu0 %v727_v58  ;;  %v741_v36 = vpack.c.bf16 %v120_v28, %v119_v27  ;;  %v136_v41 = vld [vmem:[#allocation2 + $0x348] sm:$0xff]  ;;  %v153_v46 = vld [vmem:[#allocation2 + $0x3d0] sm:$0xff]  ;;  %v154_v47 = vld [vmem:[#allocation2 + $0x3d8] sm:$0xff]  ;;  %v743_v48 = vpack.c.bf16 %v104_v38, %v103_v37  ;;  %v745_v51 = vpack.c.bf16 %v122_v43, %v121_v42 }
  0x38   :  { %345 = vmatmul.mubr.f32.vlgmr.msra.gmra.mrb[0].mxu1 %v182_v33  ;;  %730 = vmatprep.subr.bf16.mxu0 %v729_v60  ;;  %v896_v33 = vrot.slane %v30_v31, %v885_v13  ;;  %v199_v45 = vrot.slane %v185_v34, %v885_v13  ;;  %v775_v50 = vpack.c.bf16 %v136_v41, %v135_v39  ;;  %v105_v52 = vld [vmem:[#allocation2 + $0x250] sm:$0xff]  ;;  %v106_v53 = vld [vmem:[#allocation2 + $0x258] sm:$0xff]  ;;  %v123_v57 = vld [vmem:[#allocation2 + $0x2e0] sm:$0xff] }
  0x39   :  { %760 = vmatpush3.bf16.msra.mxu1 %v759_v59  ;;  %v137_v54 = vld [vmem:[#allocation2 + $0x350] sm:$0xff]  ;;  %v777_v55 = vpack.c.bf16 %v154_v47, %v153_v46  ;;  %v138_v56 = vld [vmem:[#allocation2 + $0x358] sm:$0xff]  ;;  %v124_v58 = vld [vmem:[#allocation2 + $0x2e8] sm:$0xff]  ;;  %v747_v60 = vpack.c.bf16 %v106_v53, %v105_v52 }
  0x3a   :  { %762 = vmatprep.subr.bf16.mxu1 %v761_v0  ;;  %v200_v44 = vcombine.high %v896_v33, %v896_v33  ;;  %v201_v49 = vcombine.high %v199_v45, %v199_v45  ;;  %v155_v13 = vld [vmem:[#allocation2 + $0x3e0] sm:$0xff]  ;;  %v156_v59 = vld [vmem:[#allocation2 + $0x3e8] sm:$0xff]  ;;  %v779_v61 = vpack.c.bf16 %v138_v56, %v137_v54  ;;  %v749_v62 = vpack.c.bf16 %v124_v58, %v123_v57  ;;  %v125_v4 = vld [vmem:[#allocation2 + $0x2f0] sm:$0xff] }
  0x3b   :  { %732 = vmatpush3.bf16.msra.mxu0 %v731_v6  ;;  %v107_v63 = vld [vmem:[#allocation2 + $0x260] sm:$0xff]  ;;  %v108_v0 = vld [vmem:[#allocation2 + $0x268] sm:$0xff]  ;;  %v781_v2 = vpack.c.bf16 %v156_v59, %v155_v13  ;;  %v126_v5 = vld [vmem:[#allocation2 + $0x2f8] sm:$0xff] }
  0x3c   :  { %734 = vmatprep.subr.bf16.mxu0 %v733_v8  ;;  %414 = vmatprep.mubr.f32.mxu0 %v200_v44  ;;  %v139_v1 = vld [vmem:[#allocation2 + $0x360] sm:$0xff]  ;;  %v140_v3 = vld [vmem:[#allocation2 + $0x368] sm:$0xff]  ;;  %v157_v6 = vld [vmem:[#allocation2 + $0x3f0] sm:$0xff]  ;;  %v751_v8 = vpack.c.bf16 %v108_v0, %v107_v63  ;;  %v753_v10 = vpack.c.bf16 %v126_v5, %v125_v4 }
  0x3d   :  { %764 = vmatpush3.bf16.msra.mxu1 %v763_v7  ;;  %484 = vmatprep.mubr.f32.mxu1 %v201_v49  ;;  %v158_v7 = vld [vmem:[#allocation2 + $0x3f8] sm:$0xff]  ;;  %v783_v9 = vpack.c.bf16 %v140_v3, %v139_v1  ;;  %v109_v11 = vld [vmem:[#allocation2 + $0x270] sm:$0xff] }
  0x3e   :  { %766 = vmatprep.subr.bf16.mxu1 %v765_v12  ;;  %v110_v12 = vld [vmem:[#allocation2 + $0x278] sm:$0xff]  ;;  %v785_v14 = vpack.c.bf16 %v158_v7, %v157_v6  ;;  %v141_v15 = vld [vmem:[#allocation2 + $0x370] sm:$0xff] }
  0x3f   :  { %736 = vmatpush3.bf16.msra.mxu0 %v735_v19  ;;  %v142_v16 = vld [vmem:[#allocation2 + $0x378] sm:$0xff]  ;;  %v755_v17 = vpack.c.bf16 %v110_v12, %v109_v11 }
  0x40   :  { %738 = vmatprep.subr.bf16.mxu0 %v737_v21  ;;  %v787_v18 = vpack.c.bf16 %v142_v16, %v141_v15 }
  0x41   :  { %768 = vmatpush3.bf16.msra.mxu1 %v767_v20  ;;  %v520_v20 = vld [vmem:[%s919_s2] ss:$0 sm:$0xff]  ;;  %s852_s2 = smov [#allocation5]  }
  0x42   :  { %770 = vmatprep.subr.bf16.mxu1 %v769_v25  ;;  %s511_s30 = sshll.u32 %s852_s2, 4  ;;  %s512_s30 = int_to_ptr.vmem [resolvable:$true] %s511_s30 }
  0x43   :  { %740 = vmatpush3.bf16.msra.mxu0 %v739_v32  ;;  %s822_s4 = scalar_lea.vmem %s512_s30, 32  ;;  %p827_p9 = scmp.lt.s32.totalorder %s512_s30, %s512_s30 }
  0x44   :  { %742 = vmatprep.subr.bf16.mxu0 %v741_v36  ;;  %p823_p8 = scmp.ne.s32.totalorder %s512_s30, %s822_s4  ;;  %p828_p10 = scmp.lt.s32.totalorder %s822_s4, %s822_s4 }
  0x45   :  { %772 = vmatpush3.bf16.msra.mxu1 %v771_v35 }
  0x46   :  { %774 = vmatprep.subr.bf16.mxu1 %v773_v40  ;;  %p829_p11 = por %p828_p10, %p827_p9 }
  0x47   :  { %744 = vmatpush3.bf16.msra.mxu0 %v743_v48 }
  0x48   :  { %746 = vmatprep.subr.bf16.mxu0 %v745_v51  ;;  %p830_p12 = pnand %p829_p11, %p823_p8 }
  0x49   :  { %776 = vmatpush3.bf16.msra.mxu1 %v775_v50 }
  0x4a   :  { %778 = vmatprep.subr.bf16.mxu1 %v777_v55 }
  0x4b   :  { %748 = vmatpush3.bf16.msra.mxu0 %v747_v60 }
  0x4c   :  { %750 = vmatprep.subr.bf16.mxu0 %v749_v62 }
  0x4d   :  { %780 = vmatpush3.bf16.msra.mxu1 %v779_v61 }
  0x4e   :  { %782 = vmatprep.subr.bf16.mxu1 %v781_v2 }
  0x4f   :  { %752 = vmatpush3.bf16.msra.mxu0 %v751_v8 }
  0x50   :  { %754 = vmatprep.subr.bf16.mxu0 %v753_v10 }
  0x51   :  { %784 = vmatpush3.bf16.msra.mxu1 %v783_v9 }
  0x52   :  { %786 = vmatprep.subr.bf16.mxu1 %v785_v14 }
  0x53   :  { %756 = vmatpush3.bf16.msra.mxu0 %v755_v17 }
  0x55   :  { %788 = vmatpush3.bf16.msra.mxu1 %v787_v18 }
  0x56   :  { %415 = vmatmul.mubr.f32.vlgmr.msra.gmra.mrb[2].mxu0 %v896_v33 }
  0x58   :  { %485 = vmatmul.mubr.f32.vlgmr.msra.gmra.mrb[2].mxu1 %v199_v45 }
 0x109   :  { %v553_v19 = vpop.f32.mrb[0].mxu0 }
 0x10a   :  { %v554_v21 = vpop.f32.mrb[1].mxu0 }
 0x10b   :  { %v588_v22 = vpop.f32.mrb[0].mxu1  ;;  %v555_v23 = vadd.f32 %v554_v21, %v553_v19 }
 0x10c   :  { %v589_v24 = vpop.f32.mrb[1].mxu1 }
 0x10d   :  { %v590_v25 = vadd.f32 %v589_v24, %v588_v22  ;;  %v277_v26 = vadd.f32 %v555_v23, %v520_v20 }
 0x10f   :  { %v347_v27 = vadd.f32 %v590_v25, %v277_v26 }
 0x129   :  { %v623_v28 = vpop.f32.mrb[2].mxu0 }
 0x12a   :  { %v624_v29 = vpop.f32.mrb[3].mxu0 }
 0x12b   :  { %v658_v30 = vpop.f32.mrb[2].mxu1  ;;  %v625_v31 = vadd.f32 %v624_v29, %v623_v28 }
 0x12c   :  { %v659_v32 = vpop.f32.mrb[3].mxu1 }
 0x12d   :  { %v660_v34 = vadd.f32 %v659_v32, %v658_v30  ;;  %v417_v33 = vadd.f32 %v625_v31, %v347_v27 }
 0x12f   :  { %v487_v35 = vadd.f32 %v660_v34, %v417_v33 }
 0x131   :  { %v490_v36 = vmin.f32 %v487_v35, 20.0  ;;  %vm491_vm1 = vcmp.gt.f32.partialorder %v487_v35, 20.0 }
 0x133   :  { %v492_v37 = vmul.f32 1.442695, %v490_v36 }
 0x135   :  { %796 = vpow2.f32 %v492_v37 }
 0x13f   :  { %v797_v38 = vpop.eup %796 }
 0x140   :  { %v494_v39 = vadd.f32 1.0, %v797_v38  ;;  %v497_v40 = vmul.f32 -0.5, %v797_v38  ;;  %v500_v42 = vand.u32 2147483647, %v797_v38 }
 0x142   :  { %798 = vlog2.f32 %v494_v39  ;;  %v498_v41 = vadd.f32 1.0, %v497_v40  ;;  %vm501_vm0 = vcmp.lt.f32.partialorder %v500_v42, 0.0004427343 }
 0x144   :  { %v499_v45 = vmul.f32 %v797_v38, %v498_v41 }
 0x14c   :  { %v799_v43 = vpop.eup %798 }
 0x14d   :  { %v496_v44 = vmul.f32 0.6931472, %v799_v43 }
 0x14f   :  { %v502_v46 = vsel %vm501_vm0, %v499_v45, %v496_v44 }
 0x150   :  { %v503_v47 = vsel %vm491_vm1, %v487_v35, %v502_v46 }
 0x151   :  { %504 = vst [vmem:[#allocation5] sm:$0x3] %v503_v47 }
 0x152   :  { %833 = shalt.err (!%p830_p12)
}
 0x153   :  { %s834_s7 = scalar_lea.hbm %s920_s3, 32 }
 0x154   :  { %p835_p13 = scmp.ne.s32.totalorder %s920_s3, %s834_s7  ;;  %p838_p0 = scmp.lt.u32.totalorder %s834_s7, %s920_s3 }
 0x156   :  { %p840_p1 = pnand %p838_p0, %p835_p13 }
 0x158   :  { %843 = shalt.err (!%p840_p1)
}
 0x159   :  { %514 = dma.vmem_to_hbm [thread:$0]  %s512_s30, 32, %s920_s3, [#allocation4]  }
 0x15a   :  { %846 = dma.done.wait [#allocation4], 32  }
 0x15b   :  { %847 = vsyncadd [#allocation4], 4294967264 }
 0x15c   :  { %518 = vsyncpa [#allocation3], 1 }
 0x15d   :  { %519 = vsyncpa [#allocation4], 1 }

</bundles_post_ra>
